<compile_context>
chip_gen: v5e
topology: v5e:2x2
jax: 0.10.0
libtpu: 0.0.40
codegen_flags: <defaults>
</compile_context>

<pallas_src>
import jax
import jax.numpy as jnp
import numpy as np
from jax.experimental import pallas as pl
from jax.experimental.pallas import tpu as pltpu


def fused_conv_kernel(patches_ref, w1_ref, w2_ref, b2_ref, out_ref):
    # patches_ref: (K_pad, M) bf16 -- im2col columns; row K holds 1.0 (bias row)
    # w1_ref:      (8, K_pad) bf16 -- conv1 weight, (kh,kw,c)-major K, col K = b1
    # w2_ref:      (8, 8)  f32    -- block-diagonal grouped-1x1 channel mix
    # b2_ref:      (8, 1)  f32
    # out_ref:     (N, 8, OH*OW) f32 -- batch-major interior of the final output
    v1 = jnp.dot(w1_ref[...], patches_ref[...],
                 preferred_element_type=jnp.float32)             # conv1 + b1, (8, M)
    v4 = jnp.clip(v1 + 3.0, 0.0, 6.0) * (1.0 / 6.0)              # hard-sigmoid-ish

    # grouped 1x1 conv + bias: one small MXU push on the block-diagonal matrix.
    v5 = jnp.dot(w2_ref[...], v4,
                 preferred_element_type=jnp.float32) + b2_ref[...]
    out = jnp.clip(v5, 0.0, 6.0) * (1.0 / 6.0)                   # (8, M) f32

    n_batch = out_ref.shape[0]
    ohw = out_ref.shape[2]
    for n in range(n_batch):                                     # static unroll
        out_ref[n, :, :] = out[:, n * ohw:(n + 1) * ohw]


def model_forward(x, w1, b1, w2g, b2):
    N, C, H, W = x.shape
    KH = KW = 11
    S = 5
    P = 5
    OH = (H + 2 * P - KH) // S + 1
    OW = (W + 2 * P - KW) // S + 1
    K = KH * KW * C                       # 3993
    M = N * OH * OW                       # 98 -> single lane tile (full-extent block)
    K_pad = ((K + 1 + 127) // 128) * 128  # bias row + zero fill -> 4096

    # --- glue: im2col in (K, M) orientation, ONE materialized buffer ----------
    x_cn = jnp.transpose(x, (1, 0, 2, 3)).astype(jnp.bfloat16)   # (C, N, H, W)
    x_pad = jnp.pad(x_cn, ((0, 0), (0, 0), (P, P), (P, P)))      # (C, N, H+2P, W+2P)
    cols = []
    for kh in range(KH):
        for kw in range(KW):
            cols.append(
                x_pad[:, :, kh:kh + S * OH:S, kw:kw + S * OW:S].reshape(C, M))
    cols.append(jnp.ones((1, M), jnp.bfloat16))                  # bias row (index K)
    cols.append(jnp.zeros((K_pad - K - 1, M), jnp.bfloat16))     # zero fill to K_pad
    patches = jnp.concatenate(cols, axis=0)                      # (K_pad, M) bf16

    # conv1 weight -> (8, K_pad) with matching (kh, kw, c) K order; b1 in col K.
    w1_mat = jnp.transpose(w1, (0, 2, 3, 1)).reshape(8, K)
    w1_mat = jnp.concatenate(
        [w1_mat, b1.reshape(8, 1), jnp.zeros((8, K_pad - K - 1), w1.dtype)],
        axis=1).astype(jnp.bfloat16)

    # grouped 1x1 weight (8 out, 4 in-per-group) -> block-diagonal (8_out, 8_in)
    w2_full = jnp.zeros((8, 8), jnp.float32)
    w2_full = w2_full.at[0:4, 0:4].set(w2g[0:4])   # group 0: in 0..3 -> out 0..3
    w2_full = w2_full.at[4:8, 4:8].set(w2g[4:8])   # group 1: in 4..7 -> out 4..7

    interior = pl.pallas_call(
        fused_conv_kernel,
        out_shape=jax.ShapeDtypeStruct((N, 8, OH * OW), jnp.float32),
        grid_spec=pltpu.PrefetchScalarGridSpec(
            num_scalar_prefetch=0,
            grid=(1,),
            in_specs=[
                pl.BlockSpec((K_pad, M), lambda i: (0, 0)),      # patches (bf16)
                pl.BlockSpec((8, K_pad), lambda i: (0, 0)),      # conv1 weight+bias
                pl.BlockSpec((8, 8), lambda i: (0, 0)),          # grouped-conv weight
                pl.BlockSpec((8, 1), lambda i: (0, 0)),          # grouped-conv bias
            ],
            out_specs=pl.BlockSpec((N, 8, OH * OW), lambda i: (0, 0, 0)),
        ),
        compiler_params=pltpu.CompilerParams(
            dimension_semantics=("arbitrary",),
            vmem_limit_bytes=8 * 1024 * 1024,
        ),
    )(patches, w1_mat, w2_full, b2.reshape(8, 1))

    # Border of the second conv (1x1 kernel, padding=1) only sees zero padding,
    # so its value is act(b2).
    # TODO(synk): this shortcut is specific to kernel=1 / padding=1 of other_conv.
    interior = interior.reshape(N, 8, OH, OW)                    # contiguous (free)
    border = jnp.clip(b2, 0.0, 6.0) / 6.0                        # (8,)
    full = jnp.broadcast_to(border[None, :, None, None], (N, 8, OH + 2, OW + 2))
    return full.at[:, :, 1:-1, 1:-1].set(interior)


def reference(x, w1, b1, w2g, b2):
    v1 = jax.lax.conv_general_dilated(
        x, w1, (5, 5), ((5, 5), (5, 5)),
        dimension_numbers=("NCHW", "OIHW", "NCHW"))
    v1 = v1 + b1[None, :, None, None]
    v4 = jnp.clip(v1 + 3.0, 0.0, 6.0) / 6.0
    v5 = jax.lax.conv_general_dilated(
        v4, w2g[:, :, None, None], (1, 1), ((1, 1), (1, 1)),
        dimension_numbers=("NCHW", "OIHW", "NCHW"),
        feature_group_count=2)
    v5 = v5 + b2[None, :, None, None]
    return jnp.clip(v5 + 0.0, 0.0, 6.0) / 6.0


if __name__ == "__main__":
    key = jax.random.PRNGKey(0)
    k1, k2, k3, k4, k5 = jax.random.split(key, 5)

    N, C, H, W = 2, 33, 32, 32
    x = jax.random.normal(k1, (N, C, H, W), jnp.float32)

    # TODO(synk): the original Conv2d(33, 8, 11, stride=5, padding=5, groups=3) is
    # invalid in PyTorch (out_channels=8 not divisible by groups=3); implemented
    # with groups=1 (same in/out channel counts, kernel, stride, padding).
    w1 = jax.random.normal(k2, (8, 33, 11, 11), jnp.float32) / np.sqrt(33 * 11 * 11)
    b1 = jax.random.normal(k3, (8,), jnp.float32) * 0.1
    # second conv: Conv2d(8, 8, 1, padding=1, groups=2) -> weight (8, 4, 1, 1)
    w2g = jax.random.normal(k4, (8, 4), jnp.float32) / np.sqrt(4.0)
    b2 = jax.random.normal(k5, (8,), jnp.float32) * 0.1

    fwd = jax.jit(model_forward)
    out = jax.block_until_ready(fwd(x, w1, b1, w2g, b2))

    ref = reference(x, w1, b1, w2g, b2)
    np.testing.assert_allclose(np.asarray(out), np.asarray(ref), atol=2e-2, rtol=2e-2)
    print("KERNEL_OK")
</pallas_src>

<mosaic_0001>
module attributes {stable_mosaic.version = 11 : i64} {
  func.func @fused_conv_kernel(%arg0: i32, %arg1: memref<4096x98xbf16, #tpu.memory_space<vmem>>, %arg2: memref<8x4096xbf16, #tpu.memory_space<vmem>>, %arg3: memref<8x8xf32, #tpu.memory_space<vmem>>, %arg4: memref<8x1xf32, #tpu.memory_space<vmem>>, %arg5: memref<2x8x49xf32, #tpu.memory_space<vmem>>) attributes {dimension_semantics = [#tpu.dimension_semantics<arbitrary>], iteration_bounds = array<i64: 1>, scalar_prefetch = 0 : i64, scratch_operands = 0 : i64, tpu.core_type = #tpu.core_type<tc>, window_params = [{pipeline_mode = #tpu.pipeline_mode<synchronous>, transform_indices = @transform_0, window_bounds = array<i64: 4096, 98>}, {pipeline_mode = #tpu.pipeline_mode<synchronous>, transform_indices = @transform_1, window_bounds = array<i64: 8, 4096>}, {pipeline_mode = #tpu.pipeline_mode<synchronous>, transform_indices = @transform_2, window_bounds = array<i64: 8, 8>}, {pipeline_mode = #tpu.pipeline_mode<synchronous>, transform_indices = @transform_3, window_bounds = array<i64: 8, 1>}, {pipeline_mode = #tpu.pipeline_mode<synchronous>, transform_indices = @transform_4, window_bounds = array<i64: 2, 8, 49>}]} {
    %c0 = arith.constant 0 : index
    %c0_0 = arith.constant 0 : index
    %0 = vector.load %arg2[%c0, %c0_0] : memref<8x4096xbf16, #tpu.memory_space<vmem>>, vector<8x4096xbf16>
    %c0_1 = arith.constant 0 : index
    %c0_2 = arith.constant 0 : index
    %1 = vector.load %arg1[%c0_1, %c0_2] : memref<4096x98xbf16, #tpu.memory_space<vmem>>, vector<4096x98xbf16>
    %cst = arith.constant dense<0.000000e+00> : vector<8x98xf32>
    %2 = tpu.matmul %0, %1, %cst {dimension_numbers = #tpu.dot_dimension_numbers<[1], [0], [0], [1], [0, 0, 1, 1], [], []>} : vector<8x4096xbf16>, vector<4096x98xbf16>, vector<8x98xf32> -> vector<8x98xf32>
    %cst_3 = arith.constant 3.000000e+00 : f32
    %3 = vector.broadcast %cst_3 : f32 to vector<8x98xf32>
    %4 = arith.addf %2, %3 : vector<8x98xf32>
    %cst_4 = arith.constant 0.000000e+00 : f32
    %cst_5 = arith.constant 6.000000e+00 : f32
    %5 = vector.broadcast %cst_4 : f32 to vector<8x98xf32>
    %6 = arith.maximumf %5, %4 : vector<8x98xf32>
    %7 = vector.broadcast %cst_5 : f32 to vector<8x98xf32>
    %8 = arith.minimumf %7, %6 : vector<8x98xf32>
    %cst_6 = arith.constant 0.166666672 : f32
    %9 = vector.broadcast %cst_6 : f32 to vector<8x98xf32>
    %10 = arith.mulf %8, %9 : vector<8x98xf32>
    %c0_7 = arith.constant 0 : index
    %c0_8 = arith.constant 0 : index
    %11 = vector.load %arg3[%c0_7, %c0_8] : memref<8x8xf32, #tpu.memory_space<vmem>>, vector<8x8xf32>
    %cst_9 = arith.constant dense<0.000000e+00> : vector<8x98xf32>
    %12 = tpu.matmul %11, %10, %cst_9 {dimension_numbers = #tpu.dot_dimension_numbers<[1], [0], [0], [1], [0, 0, 1, 1], [], []>} : vector<8x8xf32>, vector<8x98xf32>, vector<8x98xf32> -> vector<8x98xf32>
    %c0_10 = arith.constant 0 : index
    %c0_11 = arith.constant 0 : index
    %13 = vector.load %arg4[%c0_10, %c0_11] : memref<8x1xf32, #tpu.memory_space<vmem>>, vector<8x1xf32>
    %14 = vector.broadcast %13 : vector<8x1xf32> to vector<8x98xf32>
    %15 = arith.addf %12, %14 : vector<8x98xf32>
    %cst_12 = arith.constant 0.000000e+00 : f32
    %cst_13 = arith.constant 6.000000e+00 : f32
    %16 = vector.broadcast %cst_12 : f32 to vector<8x98xf32>
    %17 = arith.maximumf %16, %15 : vector<8x98xf32>
    %18 = vector.broadcast %cst_13 : f32 to vector<8x98xf32>
    %19 = arith.minimumf %18, %17 : vector<8x98xf32>
    %cst_14 = arith.constant 0.166666672 : f32
    %20 = vector.broadcast %cst_14 : f32 to vector<8x98xf32>
    %21 = arith.mulf %19, %20 : vector<8x98xf32>
    %22 = vector.extract_strided_slice %21 {offsets = [0, 0], sizes = [8, 49], strides = [1, 1]} : vector<8x98xf32> to vector<8x49xf32>
    %c0_15 = arith.constant 0 : index
    %c0_16 = arith.constant 0 : index
    %c0_17 = arith.constant 0 : index
    %23 = vector.load %arg5[%c0_15, %c0_16, %c0_17] : memref<2x8x49xf32, #tpu.memory_space<vmem>>, vector<1x8x49xf32>
    %24 = vector.shape_cast %23 : vector<1x8x49xf32> to vector<8x49xf32>
    %25 = vector.shape_cast %22 : vector<8x49xf32> to vector<1x8x49xf32>
    tpu.vector_store %arg5[%c0_15, %c0_16, %c0_17], %25 {strides = array<i32>} : memref<2x8x49xf32, #tpu.memory_space<vmem>>, vector<1x8x49xf32>,
    %26 = vector.extract_strided_slice %21 {offsets = [0, 49], sizes = [8, 49], strides = [1, 1]} : vector<8x98xf32> to vector<8x49xf32>
    %c1 = arith.constant 1 : index
    %c0_18 = arith.constant 0 : index
    %c0_19 = arith.constant 0 : index
    %27 = vector.load %arg5[%c1, %c0_18, %c0_19] : memref<2x8x49xf32, #tpu.memory_space<vmem>>, vector<1x8x49xf32>
    %28 = vector.shape_cast %27 : vector<1x8x49xf32> to vector<8x49xf32>
    %29 = vector.shape_cast %26 : vector<8x49xf32> to vector<1x8x49xf32>
    tpu.vector_store %arg5[%c1, %c0_18, %c0_19], %29 {strides = array<i32>} : memref<2x8x49xf32, #tpu.memory_space<vmem>>, vector<1x8x49xf32>,
    return
  }
  func.func @transform_0(%arg0: i32) -> (i32, i32) {
    %c0_i32 = arith.constant 0 : i32
    %c0_i32_0 = arith.constant 0 : i32
    %c0_i32_1 = arith.constant 0 : i32
    return %c0_i32, %c0_i32_0 : i32, i32
  }
  func.func @transform_1(%arg0: i32) -> (i32, i32) {
    %c0_i32 = arith.constant 0 : i32
    %c0_i32_0 = arith.constant 0 : i32
    %c0_i32_1 = arith.constant 0 : i32
    return %c0_i32, %c0_i32_0 : i32, i32
  }
  func.func @transform_2(%arg0: i32) -> (i32, i32) {
    %c0_i32 = arith.constant 0 : i32
    %c0_i32_0 = arith.constant 0 : i32
    %c0_i32_1 = arith.constant 0 : i32
    return %c0_i32, %c0_i32_0 : i32, i32
  }
  func.func @transform_3(%arg0: i32) -> (i32, i32) {
    %c0_i32 = arith.constant 0 : i32
    %c0_i32_0 = arith.constant 0 : i32
    %c0_i32_1 = arith.constant 0 : i32
    return %c0_i32, %c0_i32_0 : i32, i32
  }
  func.func @transform_4(%arg0: i32) -> (i32, i32, i32) {
    %c0_i32 = arith.constant 0 : i32
    %c0_i32_0 = arith.constant 0 : i32
    %c0_i32_1 = arith.constant 0 : i32
    %c0_i32_2 = arith.constant 0 : i32
    return %c0_i32, %c0_i32_0, %c0_i32_1 : i32, i32, i32
  }
}

</mosaic_0001>

<bundles_post_ra>
// kernel: model_forward.1
= control target key start
LH: loop header
LB: loop body
LE: loop exit
PB: predicated region body
PF: predicated region fallthrough
CT: control target
= control target key end

     0   :  { %vm2619_vm0 = vcmask 64512   ;;  %vm2646_vm1 = vcmask 400384   ;;  %s3944_s14 = smov 79   ;;  %s4804_s0 = inlined_call_operand.vmem [shape: bf16[4096,98], index: 0, kind: input, shape index: {}]   ;;  %s4805_s1 = inlined_call_operand.vmem [shape: bf16[8,4096], index: 1, kind: input, shape index: {}]   ;;  %s4806_s3 = inlined_call_operand.vmem [shape: f32[8,1], index: 3, kind: input, shape index: {}]   ;;  %s4807_s2 = inlined_call_operand.vmem [shape: f32[8,8], index: 2, kind: input, shape index: {}]   ;;  %s4808_s4 = inlined_call_operand.vmem [shape: f32[2,8,49], index: 4, kind: output, shape index: {}]  }
   0x1   :  { %v3691_v0 = vld [vmem:[%s4804_s0 + $0x38] sm:$0xff]  ;;  %v3690_v4 = vld [vmem:[%s4804_s0 + $0x30] sm:$0xff]  ;;  %v3689_v8 = vld [vmem:[%s4804_s0 + $0x28] sm:$0xff] }
   0x2   :  { %v3699_v1 = vld [vmem:[%s4804_s0 + $0x78] sm:$0xff]  ;;  %2193 = vmatpush.bf16.msra.mxu0 %v3691_v0  ;;  %v3698_v5 = vld [vmem:[%s4804_s0 + $0x70] sm:$0xff]  ;;  %v3697_v9 = vld [vmem:[%s4804_s0 + $0x68] sm:$0xff] }
   0x3   :  { %v3707_v2 = vld [vmem:[%s4804_s0 + $0xb8] sm:$0xff]  ;;  %2206 = vmatpush.bf16.msra.mxu1 %v3699_v1  ;;  %v3706_v6 = vld [vmem:[%s4804_s0 + $0xb0] sm:$0xff]  ;;  %v3705_v10 = vld [vmem:[%s4804_s0 + $0xa8] sm:$0xff] }
   0x4   :  { %v3715_v3 = vld [vmem:[%s4804_s0 + $0xf8] sm:$0xff]  ;;  %2219 = vmatpush.bf16.msra.mxu2 %v3707_v2  ;;  %v3714_v7 = vld [vmem:[%s4804_s0 + $0xf0] sm:$0xff]  ;;  %v3713_v11 = vld [vmem:[%s4804_s0 + $0xe8] sm:$0xff] }
   0x5   :  { %2232 = vmatpush.bf16.msra.mxu3 %v3715_v3  ;;  %v3688_v12 = vld [vmem:[%s4804_s0 + $0x20] sm:$0xff]  ;;  %v3687_v16 = vld [vmem:[%s4804_s0 + $0x18] sm:$0xff]  ;;  %v3686_v20 = vld [vmem:[%s4804_s0 + $0x10] sm:$0xff] }
   0x6   :  { %2194 = vmatpush.bf16.msra.mxu0 %v3690_v4  ;;  %v3696_v13 = vld [vmem:[%s4804_s0 + $0x60] sm:$0xff]  ;;  %v3695_v17 = vld [vmem:[%s4804_s0 + $0x58] sm:$0xff]  ;;  %v3694_v21 = vld [vmem:[%s4804_s0 + $0x50] sm:$0xff] }
   0x7   :  { %2207 = vmatpush.bf16.msra.mxu1 %v3698_v5  ;;  %v3704_v14 = vld [vmem:[%s4804_s0 + $0xa0] sm:$0xff]  ;;  %v3703_v18 = vld [vmem:[%s4804_s0 + $0x98] sm:$0xff]  ;;  %v3702_v22 = vld [vmem:[%s4804_s0 + $0x90] sm:$0xff] }
   0x8   :  { %2220 = vmatpush.bf16.msra.mxu2 %v3706_v6  ;;  %v3712_v15 = vld [vmem:[%s4804_s0 + $0xe0] sm:$0xff]  ;;  %v3711_v19 = vld [vmem:[%s4804_s0 + $0xd8] sm:$0xff]  ;;  %v3710_v23 = vld [vmem:[%s4804_s0 + $0xd0] sm:$0xff] }
   0x9   :  { %2233 = vmatpush.bf16.msra.mxu3 %v3714_v7  ;;  %v3685_v24 = vld [vmem:[%s4804_s0 + $0x8] sm:$0xff]  ;;  %v17_v29 = vld [vmem:[%s4805_s1] sm:$0xff]  ;;  %v3723_v38 = vld [vmem:[%s4804_s0 + $0x138] sm:$0xff] }
   0xa   :  { %2195 = vmatpush.bf16.msra.mxu0 %v3689_v8  ;;  %v3693_v25 = vld [vmem:[%s4804_s0 + $0x48] sm:$0xff]  ;;  %v3684_v30 = vld [vmem:[%s4804_s0] sm:$0xff]  ;;  %v561_v33 = vunpack.c.l.b16 %v17_v29  ;;  %v562_v37 = vunpack.c.h.b16 %v17_v29  ;;  %v3731_v39 = vld [vmem:[%s4804_s0 + $0x178] sm:$0xff] }
   0xb   :  { %2208 = vmatpush.bf16.msra.mxu1 %v3697_v9  ;;  %v3701_v26 = vld [vmem:[%s4804_s0 + $0x88] sm:$0xff]  ;;  %v3692_v31 = vld [vmem:[%s4804_s0 + $0x40] sm:$0xff]  ;;  %v3739_v40 = vld [vmem:[%s4804_s0 + $0x1b8] sm:$0xff] }
   0xc   :  { %2221 = vmatpush.bf16.msra.mxu2 %v3705_v10  ;;  %v3709_v27 = vld [vmem:[%s4804_s0 + $0xc8] sm:$0xff]  ;;  %v3700_v34 = vld [vmem:[%s4804_s0 + $0x80] sm:$0xff]  ;;  %v3747_v41 = vld [vmem:[%s4804_s0 + $0x1f8] sm:$0xff]  ;;  %v593_v43 = vpack.c.b16 %v561_v33, %v561_v33  ;;  %v594_v45 = vpack.c.b16 %v562_v37, %v562_v37 }
   0xd   :  { %2234 = vmatpush.bf16.msra.mxu3 %v3713_v11  ;;  %v18_v28 = vld [vmem:[%s4805_s1 + $0x8] sm:$0xff]  ;;  %v3708_v35 = vld [vmem:[%s4804_s0 + $0xc0] sm:$0xff]  ;;  %v3722_v46 = vld [vmem:[%s4804_s0 + $0x130] sm:$0xff] }
   0xe   :  { %2196 = vmatpush.bf16.msra.mxu0 %v3688_v12  ;;  %v563_v32 = vunpack.c.l.b16 %v18_v28  ;;  %v564_v36 = vunpack.c.h.b16 %v18_v28  ;;  %v3730_v47 = vld [vmem:[%s4804_s0 + $0x170] sm:$0xff]  ;;  %v3721_v50 = vld [vmem:[%s4804_s0 + $0x128] sm:$0xff]  ;;  %v3720_v54 = vld [vmem:[%s4804_s0 + $0x120] sm:$0xff] }
   0xf   :  { %2209 = vmatpush.bf16.msra.mxu1 %v3696_v13  ;;  %v3738_v48 = vld [vmem:[%s4804_s0 + $0x1b0] sm:$0xff]  ;;  %v3729_v51 = vld [vmem:[%s4804_s0 + $0x168] sm:$0xff]  ;;  %v3728_v55 = vld [vmem:[%s4804_s0 + $0x160] sm:$0xff] }
  0x10   :  { %2222 = vmatpush.bf16.msra.mxu2 %v3704_v14  ;;  %v595_v42 = vpack.c.b16 %v563_v32, %v563_v32  ;;  %v596_v44 = vpack.c.b16 %v564_v36, %v564_v36  ;;  %v3746_v49 = vld [vmem:[%s4804_s0 + $0x1f0] sm:$0xff]  ;;  %v3737_v52 = vld [vmem:[%s4804_s0 + $0x1a8] sm:$0xff]  ;;  %v3736_v56 = vld [vmem:[%s4804_s0 + $0x1a0] sm:$0xff] }
  0x11   :  { %2235 = vmatpush.bf16.msra.mxu3 %v3712_v15  ;;  %v3745_v53 = vld [vmem:[%s4804_s0 + $0x1e8] sm:$0xff]  ;;  %v3744_v57 = vld [vmem:[%s4804_s0 + $0x1e0] sm:$0xff]  ;;  %v3719_v58 = vld [vmem:[%s4804_s0 + $0x118] sm:$0xff] }
  0x12   :  { %2197 = vmatpush.bf16.msra.mxu0 %v3687_v16  ;;  %v3727_v59 = vld [vmem:[%s4804_s0 + $0x158] sm:$0xff]  ;;  %v3718_v62 = vld [vmem:[%s4804_s0 + $0x110] sm:$0xff]  ;;  %v3717_v2 = vld [vmem:[%s4804_s0 + $0x108] sm:$0xff] }
  0x13   :  { %2210 = vmatpush.bf16.msra.mxu1 %v3695_v17  ;;  %v3735_v60 = vld [vmem:[%s4804_s0 + $0x198] sm:$0xff]  ;;  %v3726_v63 = vld [vmem:[%s4804_s0 + $0x150] sm:$0xff]  ;;  %v3725_v3 = vld [vmem:[%s4804_s0 + $0x148] sm:$0xff] }
  0x14   :  { %2223 = vmatpush.bf16.msra.mxu2 %v3703_v18  ;;  %v3743_v61 = vld [vmem:[%s4804_s0 + $0x1d8] sm:$0xff]  ;;  %v3734_v0 = vld [vmem:[%s4804_s0 + $0x190] sm:$0xff]  ;;  %v3733_v4 = vld [vmem:[%s4804_s0 + $0x188] sm:$0xff] }
  0x15   :  { %2236 = vmatpush.bf16.msra.mxu3 %v3711_v19  ;;  %v3742_v1 = vld [vmem:[%s4804_s0 + $0x1d0] sm:$0xff]  ;;  %v3741_v5 = vld [vmem:[%s4804_s0 + $0x1c8] sm:$0xff]  ;;  %v20_v6 = vld [vmem:[%s4805_s1 + $0x18] sm:$0xff] }
  0x16   :  { %2198 = vmatpush.bf16.msra.mxu0 %v3686_v20  ;;  %v19_v7 = vld [vmem:[%s4805_s1 + $0x10] sm:$0xff]  ;;  %v3716_v8 = vld [vmem:[%s4804_s0 + $0x100] sm:$0xff]  ;;  %v567_v10 = vunpack.c.l.b16 %v20_v6  ;;  %v568_v14 = vunpack.c.h.b16 %v20_v6  ;;  %v3755_v16 = vld [vmem:[%s4804_s0 + $0x238] sm:$0xff] }
  0x17   :  { %2211 = vmatpush.bf16.msra.mxu1 %v3694_v21  ;;  %v3724_v9 = vld [vmem:[%s4804_s0 + $0x140] sm:$0xff]  ;;  %v565_v11 = vunpack.c.l.b16 %v19_v7  ;;  %v566_v15 = vunpack.c.h.b16 %v19_v7  ;;  %v3763_v17 = vld [vmem:[%s4804_s0 + $0x278] sm:$0xff]  ;;  %v3753_v28 = vld [vmem:[%s4804_s0 + $0x228] sm:$0xff] }
  0x18   :  { %2224 = vmatpush.bf16.msra.mxu2 %v3702_v22  ;;  %v3732_v12 = vld [vmem:[%s4804_s0 + $0x180] sm:$0xff]  ;;  %v3771_v18 = vld [vmem:[%s4804_s0 + $0x2b8] sm:$0xff]  ;;  %v599_v20 = vpack.c.b16 %v567_v10, %v567_v10  ;;  %v600_v22 = vpack.c.b16 %v568_v14, %v568_v14  ;;  %v3761_v29 = vld [vmem:[%s4804_s0 + $0x268] sm:$0xff] }
  0x19   :  { %2237 = vmatpush.bf16.msra.mxu3 %v3710_v23  ;;  %v3740_v13 = vld [vmem:[%s4804_s0 + $0x1c0] sm:$0xff]  ;;  %v3779_v19 = vld [vmem:[%s4804_s0 + $0x2f8] sm:$0xff]  ;;  %v597_v21 = vpack.c.b16 %v565_v11, %v565_v11  ;;  %v598_v23 = vpack.c.b16 %v566_v15, %v566_v15  ;;  %v3785_v6 = vld [vmem:[%s4804_s0 + $0x328] sm:$0xff] }
  0x1a   :  { %2199 = vmatpush.bf16.msra.mxu0 %v3685_v24  ;;  %v3754_v24 = vld [vmem:[%s4804_s0 + $0x230] sm:$0xff]  ;;  %v3752_v32 = vld [vmem:[%s4804_s0 + $0x220] sm:$0xff]  ;;  %v3751_v36 = vld [vmem:[%s4804_s0 + $0x218] sm:$0xff] }
  0x1b   :  { %2212 = vmatpush.bf16.msra.mxu1 %v3693_v25  ;;  %v3762_v25 = vld [vmem:[%s4804_s0 + $0x270] sm:$0xff]  ;;  %v3760_v33 = vld [vmem:[%s4804_s0 + $0x260] sm:$0xff]  ;;  %v3759_v37 = vld [vmem:[%s4804_s0 + $0x258] sm:$0xff] }
  0x1c   :  { %2225 = vmatpush.bf16.msra.mxu2 %v3701_v26  ;;  %v3770_v26 = vld [vmem:[%s4804_s0 + $0x2b0] sm:$0xff]  ;;  %v3793_v7 = vld [vmem:[%s4804_s0 + $0x368] sm:$0xff]  ;;  %v3784_v10 = vld [vmem:[%s4804_s0 + $0x320] sm:$0xff] }
  0x1d   :  { %2238 = vmatpush.bf16.msra.mxu3 %v3709_v27  ;;  %v3778_v27 = vld [vmem:[%s4804_s0 + $0x2f0] sm:$0xff]  ;;  %v3792_v11 = vld [vmem:[%s4804_s0 + $0x360] sm:$0xff]  ;;  %v3783_v14 = vld [vmem:[%s4804_s0 + $0x318] sm:$0xff] }
  0x1e   :  { %2200 = vmatpush.bf16.msra.mxu0 %v3684_v30  ;;  %v3769_v30 = vld [vmem:[%s4804_s0 + $0x2a8] sm:$0xff]  ;;  %v3791_v15 = vld [vmem:[%s4804_s0 + $0x358] sm:$0xff] }
  0x1f   :  { %2213 = vmatpush.bf16.msra.mxu1 %v3692_v31  ;;  %v3777_v31 = vld [vmem:[%s4804_s0 + $0x2e8] sm:$0xff] }
  0x20   :  { %2226 = vmatpush.bf16.msra.mxu2 %v3700_v34  ;;  %v3768_v34 = vld [vmem:[%s4804_s0 + $0x2a0] sm:$0xff] }
  0x21   :  { %2239 = vmatpush.bf16.msra.mxu3 %v3708_v35  ;;  %2201 = vmatmul.bf16.vlgmr.msra.gmra.mxu0 %v593_v43  ;;  %v3776_v35 = vld [vmem:[%s4804_s0 + $0x2e0] sm:$0xff]  ;;  %v3774_v43 = vld [vmem:[%s4804_s0 + $0x2d0] sm:$0xff] }
  0x22   :  { %2245 = vmatpush.bf16.msrb.mxu0 %v3723_v38  ;;  %2214 = vmatmul.bf16.vlgmr.msra.gmra.mxu1 %v594_v45  ;;  %v3767_v38 = vld [vmem:[%s4804_s0 + $0x298] sm:$0xff]  ;;  %v3757_v45 = vld [vmem:[%s4804_s0 + $0x248] sm:$0xff] }
  0x23   :  { %2258 = vmatpush.bf16.msrb.mxu1 %v3731_v39  ;;  %2227 = vmatmul.bf16.vlgmr.msra.gmra.mxu2 %v595_v42  ;;  %v3775_v39 = vld [vmem:[%s4804_s0 + $0x2d8] sm:$0xff]  ;;  %v3766_v42 = vld [vmem:[%s4804_s0 + $0x290] sm:$0xff] }
  0x24   :  { %2271 = vmatpush.bf16.msrb.mxu2 %v3739_v40  ;;  %2240 = vmatmul.bf16.vlgmr.msra.gmra.mxu3 %v596_v44  ;;  %v3750_v40 = vld [vmem:[%s4804_s0 + $0x210] sm:$0xff]  ;;  %v3749_v44 = vld [vmem:[%s4804_s0 + $0x208] sm:$0xff] }
  0x25   :  { %2284 = vmatpush.bf16.msrb.mxu3 %v3747_v41  ;;  %v3758_v41 = vld [vmem:[%s4804_s0 + $0x250] sm:$0xff] }
  0x26   :  { %2246 = vmatpush.bf16.msrb.mxu0 %v3722_v46  ;;  %v3765_v46 = vld [vmem:[%s4804_s0 + $0x288] sm:$0xff] }
  0x27   :  { %2259 = vmatpush.bf16.msrb.mxu1 %v3730_v47  ;;  %v3773_v47 = vld [vmem:[%s4804_s0 + $0x2c8] sm:$0xff] }
  0x28   :  { %2272 = vmatpush.bf16.msrb.mxu2 %v3738_v48  ;;  %v21_v48 = vld [vmem:[%s4805_s1 + $0x20] sm:$0xff] }
  0x29   :  { %2285 = vmatpush.bf16.msrb.mxu3 %v3746_v49  ;;  %v22_v49 = vld [vmem:[%s4805_s1 + $0x28] sm:$0xff] }
  0x2a   :  { %2247 = vmatpush.bf16.msrb.mxu0 %v3721_v50  ;;  %v3748_v50 = vld [vmem:[%s4804_s0 + $0x200] sm:$0xff] }
  0x2b   :  { %2260 = vmatpush.bf16.msrb.mxu1 %v3729_v51  ;;  %v3756_v51 = vld [vmem:[%s4804_s0 + $0x240] sm:$0xff] }
  0x2c   :  { %2273 = vmatpush.bf16.msrb.mxu2 %v3737_v52  ;;  %v569_v52 = vunpack.c.l.b16 %v21_v48 }
  0x2d   :  { %2286 = vmatpush.bf16.msrb.mxu3 %v3745_v53  ;;  %v571_v53 = vunpack.c.l.b16 %v22_v49 }
  0x2e   :  { %2248 = vmatpush.bf16.msrb.mxu0 %v3720_v54  ;;  %v3764_v54 = vld [vmem:[%s4804_s0 + $0x280] sm:$0xff] }
  0x2f   :  { %2261 = vmatpush.bf16.msrb.mxu1 %v3728_v55  ;;  %v3772_v55 = vld [vmem:[%s4804_s0 + $0x2c0] sm:$0xff] }
  0x30   :  { %2274 = vmatpush.bf16.msrb.mxu2 %v3736_v56  ;;  %v570_v56 = vunpack.c.h.b16 %v21_v48  ;;  %v3817_v48 = vld [vmem:[%s4804_s0 + $0x428] sm:$0xff] }
  0x31   :  { %2287 = vmatpush.bf16.msrb.mxu3 %v3744_v57  ;;  %v572_v57 = vunpack.c.h.b16 %v22_v49  ;;  %v3825_v49 = vld [vmem:[%s4804_s0 + $0x468] sm:$0xff] }
  0x32   :  { %2249 = vmatpush.bf16.msrb.mxu0 %v3719_v58  ;;  %v3787_v58 = vld [vmem:[%s4804_s0 + $0x338] sm:$0xff] }
  0x33   :  { %2262 = vmatpush.bf16.msrb.mxu1 %v3727_v59  ;;  %v3795_v59 = vld [vmem:[%s4804_s0 + $0x378] sm:$0xff] }
  0x34   :  { %2275 = vmatpush.bf16.msrb.mxu2 %v3735_v60  ;;  %v3803_v60 = vld [vmem:[%s4804_s0 + $0x3b8] sm:$0xff] }
  0x35   :  { %2288 = vmatpush.bf16.msrb.mxu3 %v3743_v61  ;;  %v3811_v61 = vld [vmem:[%s4804_s0 + $0x3f8] sm:$0xff] }
  0x36   :  { %2250 = vmatpush.bf16.msrb.mxu0 %v3718_v62  ;;  %v601_v62 = vpack.c.b16 %v569_v52, %v569_v52  ;;  %v3816_v52 = vld [vmem:[%s4804_s0 + $0x420] sm:$0xff] }
  0x37   :  { %2263 = vmatpush.bf16.msrb.mxu1 %v3726_v63  ;;  %v603_v63 = vpack.c.b16 %v571_v53, %v571_v53  ;;  %v3824_v53 = vld [vmem:[%s4804_s0 + $0x460] sm:$0xff] }
  0x38   :  { %2276 = vmatpush.bf16.msrb.mxu2 %v3734_v0  ;;  %v602_v0 = vpack.c.b16 %v570_v56, %v570_v56  ;;  %v3815_v56 = vld [vmem:[%s4804_s0 + $0x418] sm:$0xff] }
  0x39   :  { %2289 = vmatpush.bf16.msrb.mxu3 %v3742_v1  ;;  %v604_v1 = vpack.c.b16 %v572_v57, %v572_v57  ;;  %v3823_v57 = vld [vmem:[%s4804_s0 + $0x458] sm:$0xff] }
  0x3a   :  { %2251 = vmatpush.bf16.msrb.mxu0 %v3717_v2  ;;  %v3786_v2 = vld [vmem:[%s4804_s0 + $0x330] sm:$0xff] }
  0x3b   :  { %2264 = vmatpush.bf16.msrb.mxu1 %v3725_v3  ;;  %v3794_v3 = vld [vmem:[%s4804_s0 + $0x370] sm:$0xff] }
  0x3c   :  { %2277 = vmatpush.bf16.msrb.mxu2 %v3733_v4  ;;  %v3802_v4 = vld [vmem:[%s4804_s0 + $0x3b0] sm:$0xff] }
  0x3d   :  { %2290 = vmatpush.bf16.msrb.mxu3 %v3741_v5  ;;  %v3810_v5 = vld [vmem:[%s4804_s0 + $0x3f0] sm:$0xff] }
  0x3e   :  { %2252 = vmatpush.bf16.msrb.mxu0 %v3716_v8  ;;  %v3801_v8 = vld [vmem:[%s4804_s0 + $0x3a8] sm:$0xff] }
  0x3f   :  { %2265 = vmatpush.bf16.msrb.mxu1 %v3724_v9  ;;  %v3809_v9 = vld [vmem:[%s4804_s0 + $0x3e8] sm:$0xff] }
  0x40   :  { %2278 = vmatpush.bf16.msrb.mxu2 %v3732_v12  ;;  %v3800_v12 = vld [vmem:[%s4804_s0 + $0x3a0] sm:$0xff] }
  0x41   :  { %2291 = vmatpush.bf16.msrb.mxu3 %v3740_v13  ;;  %2253 = vmatmul.bf16.vlgmr.msrb.gmra.mxu0 %v597_v21  ;;  %v3808_v13 = vld [vmem:[%s4804_s0 + $0x3e0] sm:$0xff]  ;;  %v3806_v21 = vld [vmem:[%s4804_s0 + $0x3d0] sm:$0xff] }
  0x42   :  { %2297 = vmatpush.bf16.msra.mxu0 %v3755_v16  ;;  %2266 = vmatmul.bf16.vlgmr.msrb.gmra.mxu1 %v598_v23  ;;  %v3799_v16 = vld [vmem:[%s4804_s0 + $0x398] sm:$0xff]  ;;  %v3789_v23 = vld [vmem:[%s4804_s0 + $0x348] sm:$0xff] }
  0x43   :  { %2310 = vmatpush.bf16.msra.mxu1 %v3763_v17  ;;  %2279 = vmatmul.bf16.vlgmr.msrb.gmra.mxu2 %v599_v20  ;;  %v3807_v17 = vld [vmem:[%s4804_s0 + $0x3d8] sm:$0xff]  ;;  %v3798_v20 = vld [vmem:[%s4804_s0 + $0x390] sm:$0xff] }
  0x44   :  { %2323 = vmatpush.bf16.msra.mxu2 %v3771_v18  ;;  %2292 = vmatmul.bf16.vlgmr.msrb.gmra.mxu3 %v600_v22  ;;  %v3782_v18 = vld [vmem:[%s4804_s0 + $0x310] sm:$0xff]  ;;  %v3781_v22 = vld [vmem:[%s4804_s0 + $0x308] sm:$0xff] }
  0x45   :  { %2336 = vmatpush.bf16.msra.mxu3 %v3779_v19  ;;  %v3790_v19 = vld [vmem:[%s4804_s0 + $0x350] sm:$0xff] }
  0x46   :  { %2298 = vmatpush.bf16.msra.mxu0 %v3754_v24  ;;  %v3797_v24 = vld [vmem:[%s4804_s0 + $0x388] sm:$0xff] }
  0x47   :  { %2311 = vmatpush.bf16.msra.mxu1 %v3762_v25  ;;  %v3805_v25 = vld [vmem:[%s4804_s0 + $0x3c8] sm:$0xff] }
  0x48   :  { %2324 = vmatpush.bf16.msra.mxu2 %v3770_v26  ;;  %v23_v26 = vld [vmem:[%s4805_s1 + $0x30] sm:$0xff] }
  0x49   :  { %2337 = vmatpush.bf16.msra.mxu3 %v3778_v27  ;;  %v24_v27 = vld [vmem:[%s4805_s1 + $0x38] sm:$0xff] }
  0x4a   :  { %2299 = vmatpush.bf16.msra.mxu0 %v3753_v28  ;;  %v3780_v28 = vld [vmem:[%s4804_s0 + $0x300] sm:$0xff] }
  0x4b   :  { %2312 = vmatpush.bf16.msra.mxu1 %v3761_v29  ;;  %v3788_v29 = vld [vmem:[%s4804_s0 + $0x340] sm:$0xff] }
  0x4c   :  { %2325 = vmatpush.bf16.msra.mxu2 %v3769_v30  ;;  %v573_v30 = vunpack.c.l.b16 %v23_v26 }
  0x4d   :  { %2338 = vmatpush.bf16.msra.mxu3 %v3777_v31  ;;  %v575_v31 = vunpack.c.l.b16 %v24_v27 }
  0x4e   :  { %2300 = vmatpush.bf16.msra.mxu0 %v3752_v32  ;;  %v3796_v32 = vld [vmem:[%s4804_s0 + $0x380] sm:$0xff] }
  0x4f   :  { %2313 = vmatpush.bf16.msra.mxu1 %v3760_v33  ;;  %v3804_v33 = vld [vmem:[%s4804_s0 + $0x3c0] sm:$0xff] }
  0x50   :  { %2326 = vmatpush.bf16.msra.mxu2 %v3768_v34  ;;  %v574_v34 = vunpack.c.h.b16 %v23_v26  ;;  %v3849_v26 = vld [vmem:[%s4804_s0 + $0x528] sm:$0xff] }
  0x51   :  { %2339 = vmatpush.bf16.msra.mxu3 %v3776_v35  ;;  %v576_v35 = vunpack.c.h.b16 %v24_v27  ;;  %v3857_v27 = vld [vmem:[%s4804_s0 + $0x568] sm:$0xff] }
  0x52   :  { %2301 = vmatpush.bf16.msra.mxu0 %v3751_v36  ;;  %v3819_v36 = vld [vmem:[%s4804_s0 + $0x438] sm:$0xff] }
  0x53   :  { %2314 = vmatpush.bf16.msra.mxu1 %v3759_v37  ;;  %v3827_v37 = vld [vmem:[%s4804_s0 + $0x478] sm:$0xff] }
  0x54   :  { %2327 = vmatpush.bf16.msra.mxu2 %v3767_v38  ;;  %v3835_v38 = vld [vmem:[%s4804_s0 + $0x4b8] sm:$0xff] }
  0x55   :  { %2340 = vmatpush.bf16.msra.mxu3 %v3775_v39  ;;  %v3843_v39 = vld [vmem:[%s4804_s0 + $0x4f8] sm:$0xff] }
  0x56   :  { %2302 = vmatpush.bf16.msra.mxu0 %v3750_v40  ;;  %v605_v40 = vpack.c.b16 %v573_v30, %v573_v30 }
  0x57   :  { %2315 = vmatpush.bf16.msra.mxu1 %v3758_v41  ;;  %v607_v41 = vpack.c.b16 %v575_v31, %v575_v31  ;;  %v3848_v31 = vld [vmem:[%s4804_s0 + $0x520] sm:$0xff] }
  0x58   :  { %2328 = vmatpush.bf16.msra.mxu2 %v3766_v42  ;;  %v606_v42 = vpack.c.b16 %v574_v34, %v574_v34 }
  0x59   :  { %2341 = vmatpush.bf16.msra.mxu3 %v3774_v43  ;;  %v608_v43 = vpack.c.b16 %v576_v35, %v576_v35  ;;  %v3864_v35 = vld [vmem:[%s4804_s0 + $0x5a0] sm:$0xff] }
  0x5a   :  { %2303 = vmatpush.bf16.msra.mxu0 %v3749_v44  ;;  %v3818_v44 = vld [vmem:[%s4804_s0 + $0x430] sm:$0xff] }
  0x5b   :  { %2316 = vmatpush.bf16.msra.mxu1 %v3757_v45  ;;  %v3826_v45 = vld [vmem:[%s4804_s0 + $0x470] sm:$0xff] }
  0x5c   :  { %2329 = vmatpush.bf16.msra.mxu2 %v3765_v46  ;;  %v3834_v46 = vld [vmem:[%s4804_s0 + $0x4b0] sm:$0xff] }
  0x5d   :  { %2342 = vmatpush.bf16.msra.mxu3 %v3773_v47  ;;  %v3842_v47 = vld [vmem:[%s4804_s0 + $0x4f0] sm:$0xff] }
  0x5e   :  { %2304 = vmatpush.bf16.msra.mxu0 %v3748_v50  ;;  %v3833_v50 = vld [vmem:[%s4804_s0 + $0x4a8] sm:$0xff] }
  0x5f   :  { %2317 = vmatpush.bf16.msra.mxu1 %v3756_v51  ;;  %v3841_v51 = vld [vmem:[%s4804_s0 + $0x4e8] sm:$0xff] }
  0x60   :  { %2330 = vmatpush.bf16.msra.mxu2 %v3764_v54  ;;  %v3832_v54 = vld [vmem:[%s4804_s0 + $0x4a0] sm:$0xff] }
  0x61   :  { %2343 = vmatpush.bf16.msra.mxu3 %v3772_v55  ;;  %2305 = vmatmul.bf16.vlgmr.msra.gmra.mxu0 %v601_v62  ;;  %v3840_v55 = vld [vmem:[%s4804_s0 + $0x4e0] sm:$0xff]  ;;  %v3830_v62 = vld [vmem:[%s4804_s0 + $0x490] sm:$0xff] }
  0x62   :  { %2349 = vmatpush.bf16.msrb.mxu0 %v3787_v58  ;;  %2318 = vmatmul.bf16.vlgmr.msra.gmra.mxu1 %v602_v0  ;;  %v3831_v58 = vld [vmem:[%s4804_s0 + $0x498] sm:$0xff]  ;;  %v3813_v0 = vld [vmem:[%s4804_s0 + $0x408] sm:$0xff] }
  0x63   :  { %2362 = vmatpush.bf16.msrb.mxu1 %v3795_v59  ;;  %2331 = vmatmul.bf16.vlgmr.msra.gmra.mxu2 %v603_v63  ;;  %v3839_v59 = vld [vmem:[%s4804_s0 + $0x4d8] sm:$0xff]  ;;  %v3838_v63 = vld [vmem:[%s4804_s0 + $0x4d0] sm:$0xff] }
  0x64   :  { %2375 = vmatpush.bf16.msrb.mxu2 %v3803_v60  ;;  %2344 = vmatmul.bf16.vlgmr.msra.gmra.mxu3 %v604_v1  ;;  %v3814_v60 = vld [vmem:[%s4804_s0 + $0x410] sm:$0xff]  ;;  %v3821_v1 = vld [vmem:[%s4804_s0 + $0x448] sm:$0xff] }
  0x65   :  { %2388 = vmatpush.bf16.msrb.mxu3 %v3811_v61  ;;  %v3822_v61 = vld [vmem:[%s4804_s0 + $0x450] sm:$0xff] }
  0x66   :  { %2350 = vmatpush.bf16.msrb.mxu0 %v3786_v2  ;;  %v3829_v2 = vld [vmem:[%s4804_s0 + $0x488] sm:$0xff] }
  0x67   :  { %2363 = vmatpush.bf16.msrb.mxu1 %v3794_v3  ;;  %v3837_v3 = vld [vmem:[%s4804_s0 + $0x4c8] sm:$0xff] }
  0x68   :  { %2376 = vmatpush.bf16.msrb.mxu2 %v3802_v4  ;;  %v25_v4 = vld [vmem:[%s4805_s1 + $0x40] sm:$0xff] }
  0x69   :  { %2389 = vmatpush.bf16.msrb.mxu3 %v3810_v5  ;;  %v26_v5 = vld [vmem:[%s4805_s1 + $0x48] sm:$0xff] }
  0x6a   :  { %2351 = vmatpush.bf16.msrb.mxu0 %v3785_v6  ;;  %v3812_v6 = vld [vmem:[%s4804_s0 + $0x400] sm:$0xff] }
  0x6b   :  { %2364 = vmatpush.bf16.msrb.mxu1 %v3793_v7  ;;  %v3820_v7 = vld [vmem:[%s4804_s0 + $0x440] sm:$0xff] }
  0x6c   :  { %2377 = vmatpush.bf16.msrb.mxu2 %v3801_v8  ;;  %v577_v8 = vunpack.c.l.b16 %v25_v4 }
  0x6d   :  { %2390 = vmatpush.bf16.msrb.mxu3 %v3809_v9  ;;  %v579_v9 = vunpack.c.l.b16 %v26_v5 }
  0x6e   :  { %2352 = vmatpush.bf16.msrb.mxu0 %v3784_v10  ;;  %v3828_v10 = vld [vmem:[%s4804_s0 + $0x480] sm:$0xff] }
  0x6f   :  { %2365 = vmatpush.bf16.msrb.mxu1 %v3792_v11  ;;  %v3836_v11 = vld [vmem:[%s4804_s0 + $0x4c0] sm:$0xff] }
  0x70   :  { %2378 = vmatpush.bf16.msrb.mxu2 %v3800_v12  ;;  %v578_v12 = vunpack.c.h.b16 %v25_v4  ;;  %v3883_v4 = vld [vmem:[%s4804_s0 + $0x638] sm:$0xff] }
  0x71   :  { %2391 = vmatpush.bf16.msrb.mxu3 %v3808_v13  ;;  %v580_v13 = vunpack.c.h.b16 %v26_v5  ;;  %v3891_v5 = vld [vmem:[%s4804_s0 + $0x678] sm:$0xff] }
  0x72   :  { %2353 = vmatpush.bf16.msrb.mxu0 %v3783_v14  ;;  %v3851_v14 = vld [vmem:[%s4804_s0 + $0x538] sm:$0xff] }
  0x73   :  { %2366 = vmatpush.bf16.msrb.mxu1 %v3791_v15  ;;  %v3859_v15 = vld [vmem:[%s4804_s0 + $0x578] sm:$0xff] }
  0x74   :  { %2379 = vmatpush.bf16.msrb.mxu2 %v3799_v16  ;;  %v3867_v16 = vld [vmem:[%s4804_s0 + $0x5b8] sm:$0xff] }
  0x75   :  { %2392 = vmatpush.bf16.msrb.mxu3 %v3807_v17  ;;  %v3875_v17 = vld [vmem:[%s4804_s0 + $0x5f8] sm:$0xff] }
  0x76   :  { %2354 = vmatpush.bf16.msrb.mxu0 %v3782_v18  ;;  %v609_v18 = vpack.c.b16 %v577_v8, %v577_v8 }
  0x77   :  { %2367 = vmatpush.bf16.msrb.mxu1 %v3790_v19  ;;  %v611_v19 = vpack.c.b16 %v579_v9, %v579_v9 }
  0x78   :  { %2380 = vmatpush.bf16.msrb.mxu2 %v3798_v20  ;;  %v610_v20 = vpack.c.b16 %v578_v12, %v578_v12  ;;  %v3882_v12 = vld [vmem:[%s4804_s0 + $0x630] sm:$0xff] }
  0x79   :  { %2393 = vmatpush.bf16.msrb.mxu3 %v3806_v21  ;;  %v612_v21 = vpack.c.b16 %v580_v13, %v580_v13  ;;  %v3890_v13 = vld [vmem:[%s4804_s0 + $0x670] sm:$0xff] }
  0x7a   :  { %2355 = vmatpush.bf16.msrb.mxu0 %v3781_v22  ;;  %v3850_v22 = vld [vmem:[%s4804_s0 + $0x530] sm:$0xff] }
  0x7b   :  { %2368 = vmatpush.bf16.msrb.mxu1 %v3789_v23  ;;  %v3858_v23 = vld [vmem:[%s4804_s0 + $0x570] sm:$0xff] }
  0x7c   :  { %2381 = vmatpush.bf16.msrb.mxu2 %v3797_v24  ;;  %v3866_v24 = vld [vmem:[%s4804_s0 + $0x5b0] sm:$0xff] }
  0x7d   :  { %2394 = vmatpush.bf16.msrb.mxu3 %v3805_v25  ;;  %v3874_v25 = vld [vmem:[%s4804_s0 + $0x5f0] sm:$0xff] }
  0x7e   :  { %2356 = vmatpush.bf16.msrb.mxu0 %v3780_v28  ;;  %v3865_v28 = vld [vmem:[%s4804_s0 + $0x5a8] sm:$0xff] }
  0x7f   :  { %2369 = vmatpush.bf16.msrb.mxu1 %v3788_v29  ;;  %v3873_v29 = vld [vmem:[%s4804_s0 + $0x5e8] sm:$0xff] }
  0x80   :  { %2382 = vmatpush.bf16.msrb.mxu2 %v3796_v32  ;;  %v3856_v32 = vld [vmem:[%s4804_s0 + $0x560] sm:$0xff] }
  0x81   :  { %2395 = vmatpush.bf16.msrb.mxu3 %v3804_v33  ;;  %2357 = vmatmul.bf16.vlgmr.msrb.gmra.mxu0 %v605_v40  ;;  %v3863_v40 = vld [vmem:[%s4804_s0 + $0x598] sm:$0xff] }
  0x82   :  { %2401 = vmatpush.bf16.msra.mxu0 %v3819_v36  ;;  %2370 = vmatmul.bf16.vlgmr.msrb.gmra.mxu1 %v606_v42  ;;  %v3872_v36 = vld [vmem:[%s4804_s0 + $0x5e0] sm:$0xff] }
  0x83   :  { %2414 = vmatpush.bf16.msra.mxu1 %v3827_v37  ;;  %2383 = vmatmul.bf16.vlgmr.msrb.gmra.mxu2 %v607_v41  ;;  %v3871_v41 = vld [vmem:[%s4804_s0 + $0x5d8] sm:$0xff] }
  0x84   :  { %2427 = vmatpush.bf16.msra.mxu2 %v3835_v38  ;;  %2396 = vmatmul.bf16.vlgmr.msrb.gmra.mxu3 %v608_v43  ;;  %v3847_v38 = vld [vmem:[%s4804_s0 + $0x518] sm:$0xff] }
  0x85   :  { %2440 = vmatpush.bf16.msra.mxu3 %v3843_v39  ;;  %v3855_v39 = vld [vmem:[%s4804_s0 + $0x558] sm:$0xff] }
  0x86   :  { %2402 = vmatpush.bf16.msra.mxu0 %v3818_v44 }
  0x87   :  { %2415 = vmatpush.bf16.msra.mxu1 %v3826_v45 }
  0x88   :  { %2428 = vmatpush.bf16.msra.mxu2 %v3834_v46  ;;  %v3846_v46 = vld [vmem:[%s4804_s0 + $0x510] sm:$0xff] }
  0x89   :  { %2441 = vmatpush.bf16.msra.mxu3 %v3842_v47  ;;  %v3854_v47 = vld [vmem:[%s4804_s0 + $0x550] sm:$0xff] }
  0x8a   :  { %2403 = vmatpush.bf16.msra.mxu0 %v3817_v48 }
  0x8b   :  { %2416 = vmatpush.bf16.msra.mxu1 %v3825_v49 }
  0x8c   :  { %2429 = vmatpush.bf16.msra.mxu2 %v3833_v50  ;;  %v3862_v50 = vld [vmem:[%s4804_s0 + $0x590] sm:$0xff] }
  0x8d   :  { %2442 = vmatpush.bf16.msra.mxu3 %v3841_v51  ;;  %v3870_v51 = vld [vmem:[%s4804_s0 + $0x5d0] sm:$0xff] }
  0x8e   :  { %2404 = vmatpush.bf16.msra.mxu0 %v3816_v52  ;;  %v3845_v52 = vld [vmem:[%s4804_s0 + $0x508] sm:$0xff] }
  0x8f   :  { %2417 = vmatpush.bf16.msra.mxu1 %v3824_v53  ;;  %v3853_v53 = vld [vmem:[%s4804_s0 + $0x548] sm:$0xff] }
  0x90   :  { %2430 = vmatpush.bf16.msra.mxu2 %v3832_v54  ;;  %v3861_v54 = vld [vmem:[%s4804_s0 + $0x588] sm:$0xff] }
  0x91   :  { %2443 = vmatpush.bf16.msra.mxu3 %v3840_v55  ;;  %v3869_v55 = vld [vmem:[%s4804_s0 + $0x5c8] sm:$0xff] }
  0x92   :  { %2405 = vmatpush.bf16.msra.mxu0 %v3815_v56  ;;  %v27_v56 = vld [vmem:[%s4805_s1 + $0x50] sm:$0xff] }
  0x93   :  { %2418 = vmatpush.bf16.msra.mxu1 %v3823_v57  ;;  %v28_v57 = vld [vmem:[%s4805_s1 + $0x58] sm:$0xff] }
  0x94   :  { %2431 = vmatpush.bf16.msra.mxu2 %v3831_v58 }
  0x95   :  { %2444 = vmatpush.bf16.msra.mxu3 %v3839_v59 }
  0x96   :  { %2406 = vmatpush.bf16.msra.mxu0 %v3814_v60  ;;  %v3844_v60 = vld [vmem:[%s4804_s0 + $0x500] sm:$0xff] }
  0x97   :  { %2419 = vmatpush.bf16.msra.mxu1 %v3822_v61  ;;  %v3852_v61 = vld [vmem:[%s4804_s0 + $0x540] sm:$0xff] }
  0x98   :  { %2432 = vmatpush.bf16.msra.mxu2 %v3830_v62  ;;  %v581_v62 = vunpack.c.l.b16 %v27_v56 }
  0x99   :  { %2445 = vmatpush.bf16.msra.mxu3 %v3838_v63  ;;  %v583_v63 = vunpack.c.l.b16 %v28_v57 }
  0x9a   :  { %2407 = vmatpush.bf16.msra.mxu0 %v3813_v0  ;;  %v3860_v0 = vld [vmem:[%s4804_s0 + $0x580] sm:$0xff]  ;;  %v613_v8 = vpack.c.b16 %v581_v62, %v581_v62 }
  0x9b   :  { %2420 = vmatpush.bf16.msra.mxu1 %v3821_v1  ;;  %v3868_v1 = vld [vmem:[%s4804_s0 + $0x5c0] sm:$0xff]  ;;  %v615_v9 = vpack.c.b16 %v583_v63, %v583_v63 }
  0x9c   :  { %2433 = vmatpush.bf16.msra.mxu2 %v3829_v2  ;;  %v582_v2 = vunpack.c.h.b16 %v27_v56 }
  0x9d   :  { %2446 = vmatpush.bf16.msra.mxu3 %v3837_v3  ;;  %v584_v3 = vunpack.c.h.b16 %v28_v57 }
  0x9e   :  { %2408 = vmatpush.bf16.msra.mxu0 %v3812_v6  ;;  %v2202_v30 = vpop.f32.mrf.mxu0  ;;  %v3899_v6 = vld [vmem:[%s4804_s0 + $0x6b8] sm:$0xff] }
  0x9f   :  { %2421 = vmatpush.bf16.msra.mxu1 %v3820_v7  ;;  %v2203_v33 = vadd.f32 3.0, %v2202_v30  ;;  %v2215_v34 = vpop.f32.mrf.mxu1  ;;  %v3907_v7 = vld [vmem:[%s4804_s0 + $0x6f8] sm:$0xff] }
  0xa0   :  { %2434 = vmatpush.bf16.msra.mxu2 %v3828_v10  ;;  %v614_v10 = vpack.c.b16 %v582_v2, %v582_v2  ;;  %v3895_v30 = vld [vmem:[%s4804_s0 + $0x698] sm:$0xff]  ;;  %v3914_v2 = vld [vmem:[%s4804_s0 + $0x730] sm:$0xff] }
  0xa1   :  { %2447 = vmatpush.bf16.msra.mxu3 %v3836_v11  ;;  %2409 = vmatmul.bf16.vlgmr.msra.gmra.mxu0 %v609_v18  ;;  %v2216_v37 = vadd.f32 %v2215_v34, %v2203_v33  ;;  %v616_v11 = vpack.c.b16 %v584_v3, %v584_v3  ;;  %v3897_v18 = vld [vmem:[%s4804_s0 + $0x6a8] sm:$0xff]  ;;  %v3922_v3 = vld [vmem:[%s4804_s0 + $0x770] sm:$0xff] }
  0xa2   :  { %2453 = vmatpush.bf16.msrb.mxu0 %v3851_v14  ;;  %2422 = vmatmul.bf16.vlgmr.msra.gmra.mxu1 %v610_v20  ;;  %v3898_v14 = vld [vmem:[%s4804_s0 + $0x6b0] sm:$0xff] }
  0xa3   :  { %2466 = vmatpush.bf16.msrb.mxu1 %v3859_v15  ;;  %2435 = vmatmul.bf16.vlgmr.msra.gmra.mxu2 %v611_v19  ;;  %v3906_v15 = vld [vmem:[%s4804_s0 + $0x6f0] sm:$0xff]  ;;  %v3905_v19 = vld [vmem:[%s4804_s0 + $0x6e8] sm:$0xff] }
  0xa4   :  { %2479 = vmatpush.bf16.msrb.mxu2 %v3867_v16  ;;  %2448 = vmatmul.bf16.vlgmr.msra.gmra.mxu3 %v612_v21  ;;  %v3881_v16 = vld [vmem:[%s4804_s0 + $0x628] sm:$0xff]  ;;  %v3880_v21 = vld [vmem:[%s4804_s0 + $0x620] sm:$0xff] }
  0xa5   :  { %2492 = vmatpush.bf16.msrb.mxu3 %v3875_v17  ;;  %v3889_v17 = vld [vmem:[%s4804_s0 + $0x668] sm:$0xff] }
  0xa6   :  { %2454 = vmatpush.bf16.msrb.mxu0 %v3850_v22  ;;  %v2228_v42 = vpop.f32.mrf.mxu2  ;;  %v2204_v45 = vpop.f32.mrf.mxu0  ;;  %v3888_v22 = vld [vmem:[%s4804_s0 + $0x660] sm:$0xff] }
  0xa7   :  { %2467 = vmatpush.bf16.msrb.mxu1 %v3858_v23  ;;  %v2229_v43 = vadd.f32 %v2228_v42, %v2216_v37  ;;  %v2241_v44 = vpop.f32.mrf.mxu3  ;;  %v2217_v49 = vpop.f32.mrf.mxu1  ;;  %v3886_v37 = vld [vmem:[%s4804_s0 + $0x650] sm:$0xff]  ;;  %v3877_v42 = vld [vmem:[%s4804_s0 + $0x608] sm:$0xff] }
  0xa8   :  { %2480 = vmatpush.bf16.msrb.mxu2 %v3866_v24  ;;  %v3901_v45 = vld [vmem:[%s4804_s0 + $0x6c8] sm:$0xff] }
  0xa9   :  { %2493 = vmatpush.bf16.msrb.mxu3 %v3874_v25  ;;  %v4546_v48 = vadd.f32 %v2241_v44, %v2229_v43  ;;  %v3896_v25 = vld [vmem:[%s4804_s0 + $0x6a0] sm:$0xff]  ;;  %v3885_v43 = vld [vmem:[%s4804_s0 + $0x648] sm:$0xff] }
  0xaa   :  { %2455 = vmatpush.bf16.msrb.mxu0 %v3849_v26  ;;  %v3904_v26 = vld [vmem:[%s4804_s0 + $0x6e0] sm:$0xff]  ;;  %v3893_v44 = vld [vmem:[%s4804_s0 + $0x688] sm:$0xff] }
  0xab   :  { %2468 = vmatpush.bf16.msrb.mxu1 %v3857_v27 }
  0xac   :  { %2481 = vmatpush.bf16.msrb.mxu2 %v3865_v28  ;;  %v3879_v28 = vld [vmem:[%s4804_s0 + $0x618] sm:$0xff] }
  0xad   :  { %2494 = vmatpush.bf16.msrb.mxu3 %v3873_v29  ;;  %v3887_v29 = vld [vmem:[%s4804_s0 + $0x658] sm:$0xff] }
  0xae   :  { %2456 = vmatpush.bf16.msrb.mxu0 %v3848_v31  ;;  %v2230_v58 = vpop.f32.mrf.mxu2  ;;  %v3903_v31 = vld [vmem:[%s4804_s0 + $0x6d8] sm:$0xff] }
  0xaf   :  { %2469 = vmatpush.bf16.msrb.mxu1 %v3856_v32  ;;  %v2243_v59 = vpop.f32.mrf.mxu3  ;;  %v3915_v58 = vld [vmem:[%s4804_s0 + $0x738] sm:$0xff] }
  0xb0   :  { %2482 = vmatpush.bf16.msrb.mxu2 %v3864_v35  ;;  %v3923_v59 = vld [vmem:[%s4804_s0 + $0x778] sm:$0xff] }
  0xb1   :  { %2495 = vmatpush.bf16.msrb.mxu3 %v3872_v36  ;;  %v3878_v36 = vld [vmem:[%s4804_s0 + $0x610] sm:$0xff] }
  0xb2   :  { %2457 = vmatpush.bf16.msrb.mxu0 %v3847_v38 }
  0xb3   :  { %2470 = vmatpush.bf16.msrb.mxu1 %v3855_v39 }
  0xb4   :  { %2483 = vmatpush.bf16.msrb.mxu2 %v3863_v40  ;;  %v3894_v40 = vld [vmem:[%s4804_s0 + $0x690] sm:$0xff] }
  0xb5   :  { %2496 = vmatpush.bf16.msrb.mxu3 %v3871_v41  ;;  %v3902_v41 = vld [vmem:[%s4804_s0 + $0x6d0] sm:$0xff] }
  0xb6   :  { %2458 = vmatpush.bf16.msrb.mxu0 %v3846_v46  ;;  %v29_v46 = vld [vmem:[%s4805_s1 + $0x60] sm:$0xff] }
  0xb7   :  { %2471 = vmatpush.bf16.msrb.mxu1 %v3854_v47  ;;  %v30_v47 = vld [vmem:[%s4805_s1 + $0x68] sm:$0xff]  ;;  %v586_v56 = vunpack.c.h.b16 %v29_v46 }
  0xb8   :  { %2484 = vmatpush.bf16.msrb.mxu2 %v3862_v50  ;;  %v3876_v50 = vld [vmem:[%s4804_s0 + $0x600] sm:$0xff]  ;;  %v588_v57 = vunpack.c.h.b16 %v30_v47 }
  0xb9   :  { %2497 = vmatpush.bf16.msrb.mxu3 %v3870_v51  ;;  %v3884_v51 = vld [vmem:[%s4804_s0 + $0x640] sm:$0xff] }
  0xba   :  { %2459 = vmatpush.bf16.msrb.mxu0 %v3845_v52  ;;  %v585_v52 = vunpack.c.l.b16 %v29_v46  ;;  %v3924_v46 = vld [vmem:[%s4804_s0 + $0x780] sm:$0xff] }
  0xbb   :  { %2472 = vmatpush.bf16.msrb.mxu1 %v3853_v53  ;;  %v587_v53 = vunpack.c.l.b16 %v30_v47  ;;  %v3932_v47 = vld [vmem:[%s4804_s0 + $0x7c0] sm:$0xff] }
  0xbc   :  { %2485 = vmatpush.bf16.msrb.mxu2 %v3861_v54  ;;  %v3892_v54 = vld [vmem:[%s4804_s0 + $0x680] sm:$0xff]  ;;  %v617_v62 = vpack.c.b16 %v585_v52, %v585_v52 }
  0xbd   :  { %2498 = vmatpush.bf16.msrb.mxu3 %v3869_v55  ;;  %v3900_v55 = vld [vmem:[%s4804_s0 + $0x6c0] sm:$0xff]  ;;  %v619_v63 = vpack.c.b16 %v587_v53, %v587_v53 }
  0xbe   :  { %2460 = vmatpush.bf16.msrb.mxu0 %v3844_v60  ;;  %v2254_v20 = vpop.f32.mrf.mxu0  ;;  %v3931_v60 = vld [vmem:[%s4804_s0 + $0x7b8] sm:$0xff] }
  0xbf   :  { %2473 = vmatpush.bf16.msrb.mxu1 %v3852_v61  ;;  %v2255_v23 = vadd.f32 %v2254_v20, %v4546_v48  ;;  %v2267_v24 = vpop.f32.mrf.mxu1  ;;  %v3939_v61 = vld [vmem:[%s4804_s0 + $0x7f8] sm:$0xff] }
  0xc0   :  { %2486 = vmatpush.bf16.msrb.mxu2 %v3860_v0  ;;  %v618_v0 = vpack.c.b16 %v586_v56, %v586_v56  ;;  %v3927_v20 = vld [vmem:[%s4804_s0 + $0x798] sm:$0xff] }
  0xc1   :  { %2499 = vmatpush.bf16.msrb.mxu3 %v3868_v1  ;;  %2461 = vmatmul.bf16.vlgmr.msrb.gmra.mxu0 %v613_v8  ;;  %v2268_v27 = vadd.f32 %v2267_v24, %v2255_v23  ;;  %v620_v1 = vpack.c.b16 %v588_v57, %v588_v57  ;;  %v3929_v8 = vld [vmem:[%s4804_s0 + $0x7a8] sm:$0xff] }
  0xc2   :  { %2505 = vmatpush.bf16.msra.mxu0 %v3883_v4  ;;  %2474 = vmatmul.bf16.vlgmr.msrb.gmra.mxu1 %v614_v10  ;;  %v3930_v4 = vld [vmem:[%s4804_s0 + $0x7b0] sm:$0xff] }
  0xc3   :  { %2518 = vmatpush.bf16.msra.mxu1 %v3891_v5  ;;  %2487 = vmatmul.bf16.vlgmr.msrb.gmra.mxu2 %v615_v9  ;;  %v3938_v5 = vld [vmem:[%s4804_s0 + $0x7f0] sm:$0xff]  ;;  %v3937_v9 = vld [vmem:[%s4804_s0 + $0x7e8] sm:$0xff] }
  0xc4   :  { %2531 = vmatpush.bf16.msra.mxu2 %v3899_v6  ;;  %2500 = vmatmul.bf16.vlgmr.msrb.gmra.mxu3 %v616_v11  ;;  %v3913_v6 = vld [vmem:[%s4804_s0 + $0x728] sm:$0xff] }
  0xc5   :  { %2544 = vmatpush.bf16.msra.mxu3 %v3907_v7  ;;  %v3921_v7 = vld [vmem:[%s4804_s0 + $0x768] sm:$0xff] }
  0xc6   :  { %2506 = vmatpush.bf16.msra.mxu0 %v3882_v12  ;;  %v2280_v32 = vpop.f32.mrf.mxu2  ;;  %v2256_v35 = vpop.f32.mrf.mxu0  ;;  %v3912_v12 = vld [vmem:[%s4804_s0 + $0x720] sm:$0xff] }
  0xc7   :  { %2519 = vmatpush.bf16.msra.mxu1 %v3890_v13  ;;  %v2281_v33 = vadd.f32 %v2280_v32, %v2268_v27  ;;  %v2293_v34 = vpop.f32.mrf.mxu3  ;;  %v2269_v39 = vpop.f32.mrf.mxu1  ;;  %v3920_v13 = vld [vmem:[%s4804_s0 + $0x760] sm:$0xff]  ;;  %v3910_v27 = vld [vmem:[%s4804_s0 + $0x710] sm:$0xff]  ;;  %v3909_v32 = vld [vmem:[%s4804_s0 + $0x708] sm:$0xff] }
  0xc8   :  { %2532 = vmatpush.bf16.msra.mxu2 %v3898_v14  ;;  %v3925_v35 = vld [vmem:[%s4804_s0 + $0x788] sm:$0xff] }
  0xc9   :  { %2545 = vmatpush.bf16.msra.mxu3 %v3906_v15  ;;  %v4651_v38 = vadd.f32 %v2293_v34, %v2281_v33  ;;  %v3928_v15 = vld [vmem:[%s4804_s0 + $0x7a0] sm:$0xff]  ;;  %v3917_v33 = vld [vmem:[%s4804_s0 + $0x748] sm:$0xff]  ;;  %v31_v34 = vld [vmem:[%s4805_s1 + $0x70] sm:$0xff] }
  0xca   :  { %2507 = vmatpush.bf16.msra.mxu0 %v3881_v16  ;;  %v3936_v16 = vld [vmem:[%s4804_s0 + $0x7e0] sm:$0xff] }
  0xcb   :  { %2520 = vmatpush.bf16.msra.mxu1 %v3889_v17 }
  0xcc   :  { %2533 = vmatpush.bf16.msra.mxu2 %v3897_v18  ;;  %v3911_v18 = vld [vmem:[%s4804_s0 + $0x718] sm:$0xff] }
  0xcd   :  { %2546 = vmatpush.bf16.msra.mxu3 %v3905_v19  ;;  %v3919_v19 = vld [vmem:[%s4804_s0 + $0x758] sm:$0xff] }
  0xce   :  { %2508 = vmatpush.bf16.msra.mxu0 %v3880_v21  ;;  %v2282_v48 = vpop.f32.mrf.mxu2  ;;  %v3935_v21 = vld [vmem:[%s4804_s0 + $0x7d8] sm:$0xff] }
  0xcf   :  { %2521 = vmatpush.bf16.msra.mxu1 %v3888_v22  ;;  %v2295_v49 = vpop.f32.mrf.mxu3 }
  0xd0   :  { %2534 = vmatpush.bf16.msra.mxu2 %v3896_v25 }
  0xd1   :  { %2547 = vmatpush.bf16.msra.mxu3 %v3904_v26 }
  0xd2   :  { %2509 = vmatpush.bf16.msra.mxu0 %v3879_v28  ;;  %v3918_v28 = vld [vmem:[%s4804_s0 + $0x750] sm:$0xff] }
  0xd3   :  { %2522 = vmatpush.bf16.msra.mxu1 %v3887_v29 }
  0xd4   :  { %2535 = vmatpush.bf16.msra.mxu2 %v3895_v30  ;;  %v3926_v30 = vld [vmem:[%s4804_s0 + $0x790] sm:$0xff] }
  0xd5   :  { %2548 = vmatpush.bf16.msra.mxu3 %v3903_v31  ;;  %v3934_v31 = vld [vmem:[%s4804_s0 + $0x7d0] sm:$0xff] }
  0xd6   :  { %2510 = vmatpush.bf16.msra.mxu0 %v3878_v36  ;;  %v3933_v36 = vld [vmem:[%s4804_s0 + $0x7c8] sm:$0xff] }
  0xd7   :  { %2523 = vmatpush.bf16.msra.mxu1 %v3886_v37  ;;  %v32_v37 = vld [vmem:[%s4805_s1 + $0x78] sm:$0xff] }
  0xd8   :  { %2536 = vmatpush.bf16.msra.mxu2 %v3894_v40  ;;  %v589_v40 = vunpack.c.l.b16 %v31_v34 }
  0xd9   :  { %2549 = vmatpush.bf16.msra.mxu3 %v3902_v41  ;;  %v590_v41 = vunpack.c.h.b16 %v31_v34 }
  0xda   :  { %2511 = vmatpush.bf16.msra.mxu0 %v3877_v42  ;;  %v3908_v42 = vld [vmem:[%s4804_s0 + $0x700] sm:$0xff]  ;;  %v621_v48 = vpack.c.b16 %v589_v40, %v589_v40 }
  0xdb   :  { %2524 = vmatpush.bf16.msra.mxu1 %v3885_v43  ;;  %v3916_v43 = vld [vmem:[%s4804_s0 + $0x740] sm:$0xff]  ;;  %v622_v49 = vpack.c.b16 %v590_v41, %v590_v41 }
  0xdc   :  { %2537 = vmatpush.bf16.msra.mxu2 %v3893_v44  ;;  %v591_v44 = vunpack.c.l.b16 %v32_v37 }
  0xdd   :  { %2550 = vmatpush.bf16.msra.mxu3 %v3901_v45  ;;  %v592_v45 = vunpack.c.h.b16 %v32_v37 }
  0xde   :  { %2512 = vmatpush.bf16.msra.mxu0 %v3876_v50  ;;  %v2306_v10 = vpop.f32.mrf.mxu0  ;;  %v623_v50 = vpack.c.b16 %v591_v44, %v591_v44 }
  0xdf   :  { %2525 = vmatpush.bf16.msra.mxu1 %v3884_v51  ;;  %v2307_v11 = vadd.f32 %v2306_v10, %v4651_v38  ;;  %v2319_v14 = vpop.f32.mrf.mxu1  ;;  %v624_v51 = vpack.c.b16 %v592_v45, %v592_v45 }
  0xe0   :  { %2538 = vmatpush.bf16.msra.mxu2 %v3892_v54 }
  0xe1   :  { %2551 = vmatpush.bf16.msra.mxu3 %v3900_v55  ;;  %2513 = vmatmul.bf16.vlgmr.msra.gmra.mxu0 %v617_v62  ;;  %v2320_v17 = vadd.f32 %v2319_v14, %v2307_v11 }
  0xe2   :  { %2557 = vmatpush.bf16.msrb.mxu0 %v3915_v58  ;;  %2526 = vmatmul.bf16.vlgmr.msra.gmra.mxu1 %v618_v0 }
  0xe3   :  { %2570 = vmatpush.bf16.msrb.mxu1 %v3923_v59  ;;  %2539 = vmatmul.bf16.vlgmr.msra.gmra.mxu2 %v619_v63 }
  0xe4   :  { %2583 = vmatpush.bf16.msrb.mxu2 %v3931_v60  ;;  %2552 = vmatmul.bf16.vlgmr.msra.gmra.mxu3 %v620_v1 }
  0xe5   :  { %2596 = vmatpush.bf16.msrb.mxu3 %v3939_v61 }
  0xe6   :  { %2558 = vmatpush.bf16.msrb.mxu0 %v3914_v2  ;;  %v2332_v22 = vpop.f32.mrf.mxu2  ;;  %v2308_v25 = vpop.f32.mrf.mxu0 }
  0xe7   :  { %2571 = vmatpush.bf16.msrb.mxu1 %v3922_v3  ;;  %v2333_v23 = vadd.f32 %v2332_v22, %v2320_v17  ;;  %v2345_v24 = vpop.f32.mrf.mxu3  ;;  %v2321_v29 = vpop.f32.mrf.mxu1 }
  0xe8   :  { %2584 = vmatpush.bf16.msrb.mxu2 %v3930_v4 }
  0xe9   :  { %2597 = vmatpush.bf16.msrb.mxu3 %v3938_v5  ;;  %v2346_v26 = vadd.f32 %v2345_v24, %v2333_v23 }
  0xea   :  { %2559 = vmatpush.bf16.msrb.mxu0 %v3913_v6 }
  0xeb   :  { %2572 = vmatpush.bf16.msrb.mxu1 %v3921_v7 }
  0xec   :  { %2585 = vmatpush.bf16.msrb.mxu2 %v3929_v8 }
  0xed   :  { %2598 = vmatpush.bf16.msrb.mxu3 %v3937_v9 }
  0xee   :  { %2560 = vmatpush.bf16.msrb.mxu0 %v3912_v12  ;;  %v2334_v38 = vpop.f32.mrf.mxu2 }
  0xef   :  { %2573 = vmatpush.bf16.msrb.mxu1 %v3920_v13  ;;  %v2347_v39 = vpop.f32.mrf.mxu3 }
  0xf0   :  { %2586 = vmatpush.bf16.msrb.mxu2 %v3928_v15 }
  0xf1   :  { %2599 = vmatpush.bf16.msrb.mxu3 %v3936_v16 }
  0xf2   :  { %2561 = vmatpush.bf16.msrb.mxu0 %v3911_v18 }
  0xf3   :  { %2574 = vmatpush.bf16.msrb.mxu1 %v3919_v19 }
  0xf4   :  { %2587 = vmatpush.bf16.msrb.mxu2 %v3927_v20 }
  0xf5   :  { %2600 = vmatpush.bf16.msrb.mxu3 %v3935_v21 }
  0xf6   :  { %2562 = vmatpush.bf16.msrb.mxu0 %v3910_v27 }
  0xf7   :  { %2575 = vmatpush.bf16.msrb.mxu1 %v3918_v28 }
  0xf8   :  { %2588 = vmatpush.bf16.msrb.mxu2 %v3926_v30 }
  0xf9   :  { %2601 = vmatpush.bf16.msrb.mxu3 %v3934_v31  ;;  %v2613_v31 = vld [vmem:[%s4806_s3] sm:$0xff] }
  0xfa   :  { %2563 = vmatpush.bf16.msrb.mxu0 %v3909_v32 }
  0xfb   :  { %2576 = vmatpush.bf16.msrb.mxu1 %v3917_v33  ;;  %v3943_v33 = vmov 0  }
  0xfc   :  { %2589 = vmatpush.bf16.msrb.mxu2 %v3925_v35  ;;  %3942 = vset.pattern.permute.xlu0 %v3943_v33 }
  0xfd   :  { %2602 = vmatpush.bf16.msrb.mxu3 %v3933_v36  ;;  %2616 = vperm.xlu0 %3942, %v2613_v31  }
  0xfe   :  { %2564 = vmatpush.bf16.msrb.mxu0 %v3908_v42  ;;  %v2358_v52 = vpop.f32.mrf.mxu0 }
  0xff   :  { %2577 = vmatpush.bf16.msrb.mxu1 %v3916_v43  ;;  %v2359_v53 = vadd.f32 %v2358_v52, %v2346_v26  ;;  %v2371_v54 = vpop.f32.mrf.mxu1 }
 0x100   :  { %2590 = vmatpush.bf16.msrb.mxu2 %v3924_v46 }
 0x101   :  { %2603 = vmatpush.bf16.msrb.mxu3 %v3932_v47  ;;  %2565 = vmatmul.bf16.vlgmr.msrb.gmra.mxu0 %v621_v48  ;;  %v2372_v55 = vadd.f32 %v2371_v54, %v2359_v53  ;;  %v2612_v53 = vld [vmem:[%s4807_s2] sm:$0xff] }
 0x102   :  { %2578 = vmatmul.bf16.vlgmr.msrb.gmra.mxu1 %v622_v49 }
 0x103   :  { %2591 = vmatmul.bf16.vlgmr.msrb.gmra.mxu2 %v623_v50 }
 0x104   :  { %2604 = vmatmul.bf16.vlgmr.msrb.gmra.mxu3 %v624_v51 }
 0x106   :  { %v2384_v56 = vpop.f32.mrf.mxu2  ;;  %v2360_v59 = vpop.f32.mrf.mxu0 }
 0x107   :  { %v2385_v57 = vadd.f32 %v2384_v56, %v2372_v55  ;;  %v2397_v58 = vpop.f32.mrf.mxu3  ;;  %v2373_v61 = vpop.f32.mrf.mxu1 }
 0x109   :  { %v2398_v60 = vadd.f32 %v2397_v58, %v2385_v57 }
 0x10e   :  { %v2386_v62 = vpop.f32.mrf.mxu2 }
 0x10f   :  { %v2399_v63 = vpop.f32.mrf.mxu3 }
 0x11e   :  { %v2410_v0 = vpop.f32.mrf.mxu0 }
 0x11f   :  { %v2411_v1 = vadd.f32 %v2410_v0, %v2398_v60  ;;  %v2423_v2 = vpop.f32.mrf.mxu1 }
 0x121   :  { %v2424_v3 = vadd.f32 %v2423_v2, %v2411_v1 }
 0x126   :  { %v2436_v4 = vpop.f32.mrf.mxu2  ;;  %v2412_v7 = vpop.f32.mrf.mxu0 }
 0x127   :  { %v2437_v5 = vadd.f32 %v2436_v4, %v2424_v3  ;;  %v2449_v6 = vpop.f32.mrf.mxu3  ;;  %v2425_v9 = vpop.f32.mrf.mxu1 }
 0x129   :  { %v2450_v8 = vadd.f32 %v2449_v6, %v2437_v5 }
 0x12e   :  { %v2438_v10 = vpop.f32.mrf.mxu2 }
 0x12f   :  { %v2451_v11 = vpop.f32.mrf.mxu3 }
 0x13e   :  { %v2462_v12 = vpop.f32.mrf.mxu0 }
 0x13f   :  { %v2475_v13 = vpop.f32.mrf.mxu1  ;;  %v2463_v23 = vadd.f32 %v2462_v12, %v2450_v8 }
 0x141   :  { %v2476_v27 = vadd.f32 %v2475_v13, %v2463_v23 }
 0x146   :  { %v2488_v14 = vpop.f32.mrf.mxu2  ;;  %v2464_v16 = vpop.f32.mrf.mxu0 }
 0x147   :  { %v2501_v15 = vpop.f32.mrf.mxu3  ;;  %v2477_v17 = vpop.f32.mrf.mxu1  ;;  %v2489_v28 = vadd.f32 %v2488_v14, %v2476_v27 }
 0x149   :  { %v2502_v32 = vadd.f32 %v2501_v15, %v2489_v28 }
 0x14e   :  { %v2490_v18 = vpop.f32.mrf.mxu2 }
 0x14f   :  { %v2503_v19 = vpop.f32.mrf.mxu3 }
 0x15e   :  { %v2514_v20 = vpop.f32.mrf.mxu0 }
 0x15f   :  { %v2527_v21 = vpop.f32.mrf.mxu1  ;;  %v2515_v34 = vadd.f32 %v2514_v20, %v2502_v32 }
 0x161   :  { %v2528_v35 = vadd.f32 %v2527_v21, %v2515_v34 }
 0x166   :  { %v2540_v22 = vpop.f32.mrf.mxu2  ;;  %v2516_v25 = vpop.f32.mrf.mxu0 }
 0x167   :  { %v2553_v24 = vpop.f32.mrf.mxu3  ;;  %v2529_v26 = vpop.f32.mrf.mxu1  ;;  %v2541_v36 = vadd.f32 %v2540_v22, %v2528_v35 }
 0x169   :  { %v2554_v37 = vadd.f32 %v2553_v24, %v2541_v36 }
 0x16e   :  { %v2542_v29 = vpop.f32.mrf.mxu2 }
 0x16f   :  { %v2555_v30 = vpop.f32.mrf.mxu3  ;;  %v2617_v54 = vpop.permute.xlu0 %2616 }
 0x17e   :  { %v2566_v38 = vpop.f32.mrf.mxu0 }
 0x17f   :  { %v2579_v39 = vpop.f32.mrf.mxu1  ;;  %v2567_v40 = vadd.f32 %v2566_v38, %v2554_v37 }
 0x181   :  { %v2580_v41 = vadd.f32 %v2579_v39, %v2567_v40 }
 0x186   :  { %v2592_v42 = vpop.f32.mrf.mxu2  ;;  %v2568_v45 = vpop.f32.mrf.mxu0 }
 0x187   :  { %v2605_v43 = vpop.f32.mrf.mxu3  ;;  %v2593_v44 = vadd.f32 %v2592_v42, %v2580_v41  ;;  %v2581_v46 = vpop.f32.mrf.mxu1 }
 0x189   :  { %v2606_v47 = vadd.f32 %v2605_v43, %v2593_v44 }
 0x18b   :  { %v2609_v48 = vmax.f32 %v2606_v47, 0.0 }
 0x18d   :  { %v2610_v49 = vmin.f32 %v2609_v48, 6.0 }
 0x18e   :  { %v2594_v50 = vpop.f32.mrf.mxu2 }
 0x18f   :  { %v2607_v51 = vpop.f32.mrf.mxu3  ;;  %v2611_v52 = vmul.f32 0.16666667, %v2610_v49 }
 0x191   :  { %2638 = vmatpush.msra.mxu0 %v2611_v52 }
 0x192   :  { %3682 = vmatmul.msk.f32.vlgmr.msra.gmra.mxu0 %vm2619_vm0, %v2612_v53 }
 0x20f   :  { %v2640_v55 = vpop.f32.mrf.mxu0 }
 0x210   :  { %v2641_v56 = vadd.f32 %v2640_v55, %v2617_v54 }
 0x212   :  { %v2643_v57 = vmax.f32 %v2641_v56, 0.0 }
 0x214   :  { %v2644_v58 = vmin.f32 %v2643_v57, 6.0 }
 0x216   :  { %v2645_v59 = vmul.f32 0.16666667, %v2644_v58 }
 0x218   :  { %2649 = vrot.lane.b32.xlu0 %v2645_v59, %s3944_s14  ;;  %2647 = vst.msk [vmem:[%s4808_s4] sm:$0xff] %vm2646_vm1, %v2645_v59 }
 0x28a   :  { %v2650_v60 = vpop.permute.xlu0 %2649 }
 0x28b   :  { %3683 = vst.msk [vmem:[%s4808_s4 + $0x8] sm:$0xff] %vm2646_vm1, %v2650_v60 }

</bundles_post_ra>
